<compile_context>
chip_gen: v7x
topology: tpu7x:2x2x1
jax: 0.10.0
libtpu: 0.0.40
codegen_flags: <defaults>
</compile_context>

<pallas_src>
import jax
import jax.numpy as jnp
from jax.experimental import pallas as pl
from jax.experimental.pallas import tpu as pltpu


def _round_up(x, m):
    return (x + m - 1) // m * m


def _logits_d_kernel(x_ref, w1t_ref, b1_ref, w2t_ref, out_ref):
    """Fused: relu(x + x @ (W1^T/T) + b1) @ W2^T_padded for one row tile."""
    x = x_ref[...]                                           # (tm, Cp), input dtype
    # LHS in the weight dtype so bf16/fp8 weights hit the MXU at full rate;
    # accumulate in f32 (cast is a VPU op hidden under the MXU slot).
    x_lhs = x if x.dtype == w1t_ref.dtype else x.astype(w1t_ref.dtype)
    h = jnp.dot(x_lhs, w1t_ref[...], preferred_element_type=jnp.float32)
    h = h + b1_ref[...].astype(jnp.float32)                  # (tm, Hp)
    # Residual with the *un-scaled* logits (f32), then ReLU.
    h = jnp.maximum(x.astype(jnp.float32) + h, 0.0)
    # Second matmul; feed the weight dtype, accumulate in f32.
    h_rhs = h if h.dtype == w2t_ref.dtype else h.astype(w2t_ref.dtype)
    dist = jnp.dot(h_rhs, w2t_ref[...], preferred_element_type=jnp.float32)
    out_ref[...] = dist.astype(out_ref.dtype)                # (tm, Cp1_pad)


def logits_d_forward(logits, w1, b1, w2, temperature=1.0, *,
                     tm=512, weight_dtype=None, out_dtype=None):
    """logits: (N, C); w1: (H, C); b1: (H,); w2: (C+1, H).  Returns (N, C+1).

    weight_dtype: optionally cast the resident weights (e.g. jnp.bfloat16) to
    halve resident VMEM and double MXU rate; f32 accumulation is kept.
    out_dtype: optionally emit the output in a narrower dtype (halves the
    output HBM traffic / store-slot pressure on v5e).
    """
    N, C = logits.shape
    H, C_in = w1.shape
    Cp1, H2 = w2.shape
    assert C_in == C and H2 == H
    assert H == C, "residual add requires n_hidden == n_class"

    w_dtype = jnp.dtype(weight_dtype) if weight_dtype is not None else jnp.dtype(w1.dtype)
    o_dtype = jnp.dtype(out_dtype) if out_dtype is not None else jnp.dtype(logits.dtype)

    # ---- contraction-dim (K) alignment: pad only when large and misaligned,
    # so the MXU gets full 128/256-wide K tiles; zero padding is exact.
    Cp = _round_up(C, 128) if (C >= 128 and C % 128 != 0) else C
    Hp = Cp                                     # H == C by construction
    # Lane-dense output: pad C+1 up to a multiple of 128 with zero weight cols.
    Cp1_pad = _round_up(Cp1, 128)

    # ---- weight prep: fold 1/temperature into W1^T in f32, then cast.
    inv_t = 1.0 / float(temperature)
    w1t = (jnp.transpose(w1).astype(jnp.float32) * inv_t).astype(w_dtype)   # (C, H)
    if (Cp, Hp) != (C, H):
        w1t = jnp.zeros((Cp, Hp), w_dtype).at[:C, :H].set(w1t)
    # Bias stays f32 (tiny, added in f32 inside the kernel anyway).
    b1_2d = jnp.zeros((1, Hp), jnp.float32).at[0, :H].set(b1.astype(jnp.float32))
    w2t = jnp.zeros((Hp, Cp1_pad), w_dtype).at[:H, :Cp1].set(
        jnp.transpose(w2).astype(w_dtype))

    x = logits
    if Cp != C:
        x = jnp.pad(x, ((0, 0), (0, Cp - C)))

    # ---- row tile: multiple of 8 sublanes, clamped to the problem, and split
    # so the grid has >= 2 steps when possible (v7x has 2 TCs; the extra step
    # costs ~0.35us on 1-TC chips, negligible).
    tm = max(8, _round_up(min(tm, _round_up(N, 8)), 8))
    if N > 8 and tm >= _round_up(N, 8):
        tm = max(8, _round_up((N + 1) // 2, 8))

    # ---- VMEM budget: single-buffered weights + double-buffered I/O row
    # tiles + in-kernel f32 intermediates (x upcast, h, dist).
    isz_in = jnp.dtype(logits.dtype).itemsize
    isz_out = o_dtype.itemsize
    isz_w = w_dtype.itemsize
    try:
        vmem_cap = int(pltpu.get_tpu_info().vmem_capacity_bytes)
    except Exception:
        vmem_cap = 64 * 1024 * 1024            # conservative (v7x per-TC)
    budget = int(0.9 * vmem_cap)

    def vmem_need(tm_):
        weights = (Cp * Hp + Hp * Cp1_pad + Hp) * isz_w            # Buffered(1)
        io = 2 * tm_ * (Cp * isz_in + Cp1_pad * isz_out)           # double-buffered
        f32_tmp = tm_ * (Cp + Hp + Cp1_pad) * 4                    # x.f32, h, dist
        return weights + io + f32_tmp

    while tm > 8 and int(1.25 * vmem_need(tm)) > budget:
        tm = max(8, _round_up(tm // 2, 8))
    vmem_limit = int(min(max(int(1.25 * vmem_need(tm)), 16 * 1024 * 1024), budget))
    # TODO(synk): for C/H too large for resident weights even at bf16 on v7x,
    # add a K-tiled path (grid over Cp / Cp1_pad with f32 accumulator scratch).

    grid = (pl.cdiv(N, tm),)       # ragged last block: Pallas drops OOB writes
    resident = pl.Buffered(1)      # constant index_map -> no double buffer

    out_padded = pl.pallas_call(
        _logits_d_kernel,
        out_shape=jax.ShapeDtypeStruct((N, Cp1_pad), o_dtype),
        grid_spec=pl.GridSpec(
            grid=grid,
            in_specs=[
                pl.BlockSpec((tm, Cp), lambda i: (i, 0)),                 # x row tile
                pl.BlockSpec((Cp, Hp), lambda i: (0, 0),
                             pipeline_mode=resident),                     # W1^T / T
                pl.BlockSpec((1, Hp), lambda i: (0, 0),
                             pipeline_mode=resident),                     # b1
                pl.BlockSpec((Hp, Cp1_pad), lambda i: (0, 0),
                             pipeline_mode=resident),                     # W2^T padded
            ],
            out_specs=pl.BlockSpec((tm, Cp1_pad), lambda i: (i, 0)),
        ),
        compiler_params=pltpu.CompilerParams(
            dimension_semantics=("parallel",),
            vmem_limit_bytes=vmem_limit,
        ),
    )(x, w1t, b1_2d, w2t)

    return out_padded[:, :Cp1]


def logits_d_reference(logits, w1, b1, w2, temperature=1.0):
    out = (logits / temperature) @ w1.T + b1
    out = jnp.maximum(logits + out, 0.0)
    return out @ w2.T


if __name__ == "__main__":
    # Small shapes consistent with the module: N tokens, n_class == n_hidden.
    N, n_class = 8, 32
    n_hidden = n_class                      # required by the residual connection

    key = jax.random.PRNGKey(0)
    k_x, k_w1, k_b1, k_w2 = jax.random.split(key, 4)

    logits = jax.random.normal(k_x, (N, n_class), dtype=jnp.float32)
    # Deterministic synthetic parameters (shapes follow nn.Linear conventions).
    w1 = jax.random.normal(k_w1, (n_hidden, n_class), dtype=jnp.float32) * 0.1
    b1 = jax.random.normal(k_b1, (n_hidden,), dtype=jnp.float32) * 0.1
    w2 = jax.random.normal(k_w2, (n_class + 1, n_hidden), dtype=jnp.float32) * 0.1

    temperature = 2.0

    out = logits_d_forward(logits, w1, b1, w2, temperature)
    out = jax.block_until_ready(out)

    ref = logits_d_reference(logits, w1, b1, w2, temperature)
    assert out.shape == (N, n_class + 1)
    assert jnp.allclose(out, ref, atol=1e-5, rtol=1e-5), "mismatch vs reference"

    print("KERNEL_OK")
</pallas_src>

<mosaic_0001>
module attributes {stable_mosaic.version = 11 : i64} {
  func.func @_logits_d_kernel(%arg0: i32, %arg1: memref<8x32xf32, #tpu.memory_space<vmem>>, %arg2: memref<32x32xf32, #tpu.memory_space<vmem>>, %arg3: memref<1x32xf32, #tpu.memory_space<vmem>>, %arg4: memref<32x128xf32, #tpu.memory_space<vmem>>, %arg5: memref<8x128xf32, #tpu.memory_space<vmem>>) attributes {dimension_semantics = [#tpu.dimension_semantics<parallel>], iteration_bounds = array<i64: 1>, scalar_prefetch = 0 : i64, scratch_operands = 0 : i64, tpu.core_type = #tpu.core_type<tc>, window_params = [{transform_indices = @transform_0, window_bounds = array<i64: 8, 32>}, {pipeline_mode = #tpu.pipeline_mode<synchronous>, transform_indices = @transform_1, window_bounds = array<i64: 32, 32>}, {pipeline_mode = #tpu.pipeline_mode<synchronous>, transform_indices = @transform_2, window_bounds = array<i64: 1, 32>}, {pipeline_mode = #tpu.pipeline_mode<synchronous>, transform_indices = @transform_3, window_bounds = array<i64: 32, 128>}, {transform_indices = @transform_4, window_bounds = array<i64: 8, 128>}]} {
    %c0 = arith.constant 0 : index
    %c0_0 = arith.constant 0 : index
    %0 = vector.load %arg1[%c0, %c0_0] : memref<8x32xf32, #tpu.memory_space<vmem>>, vector<8x32xf32>
    %c0_1 = arith.constant 0 : index
    %c0_2 = arith.constant 0 : index
    %1 = vector.load %arg2[%c0_1, %c0_2] : memref<32x32xf32, #tpu.memory_space<vmem>>, vector<32x32xf32>
    %cst = arith.constant dense<0.000000e+00> : vector<8x32xf32>
    %2 = tpu.matmul %0, %1, %cst {dimension_numbers = #tpu.dot_dimension_numbers<[1], [0], [0], [1], [0, 0, 1, 1], [], []>} : vector<8x32xf32>, vector<32x32xf32>, vector<8x32xf32> -> vector<8x32xf32>
    %c0_3 = arith.constant 0 : index
    %c0_4 = arith.constant 0 : index
    %3 = vector.load %arg3[%c0_3, %c0_4] : memref<1x32xf32, #tpu.memory_space<vmem>>, vector<1x32xf32>
    %4 = vector.broadcast %3 : vector<1x32xf32> to vector<8x32xf32>
    %5 = arith.addf %2, %4 : vector<8x32xf32>
    %6 = arith.addf %0, %5 : vector<8x32xf32>
    %cst_5 = arith.constant 0.000000e+00 : f32
    %7 = vector.broadcast %cst_5 : f32 to vector<8x32xf32>
    %8 = arith.maximumf %6, %7 : vector<8x32xf32>
    %c0_6 = arith.constant 0 : index
    %c0_7 = arith.constant 0 : index
    %9 = vector.load %arg4[%c0_6, %c0_7] : memref<32x128xf32, #tpu.memory_space<vmem>>, vector<32x128xf32>
    %cst_8 = arith.constant dense<0.000000e+00> : vector<8x128xf32>
    %10 = tpu.matmul %8, %9, %cst_8 {dimension_numbers = #tpu.dot_dimension_numbers<[1], [0], [0], [1], [0, 0, 1, 1], [], []>} : vector<8x32xf32>, vector<32x128xf32>, vector<8x128xf32> -> vector<8x128xf32>
    %c0_9 = arith.constant 0 : index
    %c0_10 = arith.constant 0 : index
    %11 = vector.load %arg5[%c0_9, %c0_10] : memref<8x128xf32, #tpu.memory_space<vmem>>, vector<8x128xf32>
    tpu.vector_store %arg5[%c0_9, %c0_10], %10 {strides = array<i32>} : memref<8x128xf32, #tpu.memory_space<vmem>>, vector<8x128xf32>,
    return
  }
  func.func @transform_0(%arg0: i32) -> (i32, i32) {
    %c0_i32 = arith.constant 0 : i32
    %c0_i32_0 = arith.constant 0 : i32
    return %arg0, %c0_i32 : i32, i32
  }
  func.func @transform_1(%arg0: i32) -> (i32, i32) {
    %c0_i32 = arith.constant 0 : i32
    %c0_i32_0 = arith.constant 0 : i32
    %c0_i32_1 = arith.constant 0 : i32
    return %c0_i32, %c0_i32_0 : i32, i32
  }
  func.func @transform_2(%arg0: i32) -> (i32, i32) {
    %c0_i32 = arith.constant 0 : i32
    %c0_i32_0 = arith.constant 0 : i32
    %c0_i32_1 = arith.constant 0 : i32
    return %c0_i32, %c0_i32_0 : i32, i32
  }
  func.func @transform_3(%arg0: i32) -> (i32, i32) {
    %c0_i32 = arith.constant 0 : i32
    %c0_i32_0 = arith.constant 0 : i32
    %c0_i32_1 = arith.constant 0 : i32
    return %c0_i32, %c0_i32_0 : i32, i32
  }
  func.func @transform_4(%arg0: i32) -> (i32, i32) {
    %c0_i32 = arith.constant 0 : i32
    %c0_i32_0 = arith.constant 0 : i32
    return %arg0, %c0_i32 : i32, i32
  }
}

</mosaic_0001>

<bundles_post_ra>
// kernel: tpu_custom_call.1
= control target key start
LH: loop header
LB: loop body
LE: loop exit
PB: predicated region body
PF: predicated region fallthrough
CT: control target
= control target key end

     0   :  { %9 = vsyncpa [#allocation3], 0  ;;  %s482_s0 = inlined_call_operand.hbm [shape: f32[8,32], index: 0, kind: input, shape index: {}]   ;;  %s483_s1 = inlined_call_operand.hbm [shape: f32[32,32], index: 1, kind: input, shape index: {}]   ;;  %s484_s2 = inlined_call_operand.vmem [shape: f32[1,32], index: 2, kind: input, shape index: {}]   ;;  %s485_s3 = inlined_call_operand.hbm [shape: f32[32,128], index: 3, kind: input, shape index: {}]   ;;  %s486_s4 = inlined_call_operand.hbm [shape: f32[8,128], index: 4, kind: output, shape index: {}]  }
   0x1   :  { %10 = vsyncpa [#allocation6], 0 }
   0x2   :  { %11 = vsyncpa [#allocation4], 0  ;;  %s389_s15 = smov [#allocation5]   ;;  %s295_s19 = scalar_lea.hbm %s483_s1, 512 }
   0x3   :  { %s27_s16 = sshll.u32 %s389_s15, 4  ;;  %p296_p0 = scmp.ne.s32.totalorder %s483_s1, %s295_s19  ;;  %s28_s16 = int_to_ptr.vmem [resolvable:$true] %s27_s16 }
   0x4   :  { %p299_p1 = scmp.lt.u32.totalorder %s295_s19, %s483_s1 }
   0x6   :  { %p301_p2 = pnand %p299_p1, %p296_p0 }
   0x8   :  { %304 = shalt.err (!%p301_p2)
}
   0x9   :  { %s305_s24 = scalar_lea.vmem %s28_s16, 512  ;;  %p310_p4 = scmp.lt.s32.totalorder %s28_s16, %s28_s16 }
   0xa   :  { %p306_p3 = scmp.ne.s32.totalorder %s28_s16, %s305_s24  ;;  %p311_p5 = scmp.lt.s32.totalorder %s305_s24, %s305_s24 }
   0xc   :  { %p312_p6 = por %p311_p5, %p310_p4 }
   0xe   :  { %p313_p7 = pnand %p312_p6, %p306_p3 }
  0x10   :  { %316 = shalt.err (!%p313_p7)
}
  0x11   :  { %s390_s25 = smov 128   ;;  %s391_s26 = smov 8  }
  0x12   :  { %33 = dma.hbm_to_vmem [thread:$0]  %s483_s1, 512, %s28_s16, [#allocation6], %s390_s25, %s390_s25, %s391_s26  }
  0x13   :  { %s392_s29 = smov [#allocation2]   ;;  %s393_s5 = smov [#allocation7]  }
  0x14   :  { %s18_s30 = sshll.u32 %s392_s29, 4  ;;  %s41_s6 = sshll.u32 %s393_s5, 4  ;;  %s19_s30 = int_to_ptr.vmem [resolvable:$true] %s18_s30  ;;  %s42_s6 = int_to_ptr.vmem [resolvable:$true] %s41_s6 }
  0x15   :  { %s317_s9 = scalar_lea.hbm %s482_s0, 128 }
  0x16   :  { %p318_p8 = scmp.ne.s32.totalorder %s482_s0, %s317_s9  ;;  %p321_p9 = scmp.lt.u32.totalorder %s317_s9, %s482_s0 }
  0x18   :  { %p323_p10 = pnand %p321_p9, %p318_p8 }
  0x1a   :  { %326 = shalt.err (!%p323_p10)
}
  0x1b   :  { %s327_s1 = scalar_lea.vmem %s19_s30, 128  ;;  %p332_p12 = scmp.lt.s32.totalorder %s19_s30, %s19_s30 }
  0x1c   :  { %p328_p11 = scmp.ne.s32.totalorder %s19_s30, %s327_s1  ;;  %p333_p13 = scmp.lt.s32.totalorder %s327_s1, %s327_s1 }
  0x1e   :  { %p334_p0 = por %p333_p13, %p332_p12 }
  0x20   :  { %p335_p1 = pnand %p334_p0, %p328_p11 }
  0x22   :  { %338 = shalt.err (!%p335_p1)
}
  0x23   :  { %21 = dma.hbm_to_vmem [thread:$0]  %s482_s0, 128, %s19_s30, [#allocation3]  }
  0x24   :  { %s339_s18 = scalar_lea.hbm %s485_s3, 512 }
  0x25   :  { %p340_p2 = scmp.ne.s32.totalorder %s485_s3, %s339_s18  ;;  %p343_p3 = scmp.lt.u32.totalorder %s339_s18, %s485_s3 }
  0x27   :  { %p345_p4 = pnand %p343_p3, %p340_p2 }
  0x29   :  { %348 = shalt.err (!%p345_p4)
}
  0x2a   :  { %s349_s23 = scalar_lea.vmem %s42_s6, 512  ;;  %p354_p6 = scmp.lt.s32.totalorder %s42_s6, %s42_s6 }
  0x2b   :  { %p350_p5 = scmp.ne.s32.totalorder %s42_s6, %s349_s23  ;;  %p355_p7 = scmp.lt.s32.totalorder %s349_s23, %s349_s23 }
  0x2d   :  { %p356_p8 = por %p355_p7, %p354_p6 }
  0x2f   :  { %p357_p9 = pnand %p356_p8, %p350_p5 }
  0x31   :  { %360 = shalt.err (!%p357_p9)
}
  0x32   :  { %47 = dma.hbm_to_vmem [thread:$0]  %s485_s3, 512, %s42_s6, [#allocation6], %s390_s25, %s390_s25, %s391_s26  }
  0x33   :  { %383 = dma.done.wait [#allocation3], 128  }
  0x34   :  { %384 = vsyncadd [#allocation3], 4294967168 }
  0x35   :  { %385 = dma.done.wait [#allocation6], 1024  }
  0x36   :  { %386 = vsyncadd [#allocation6], 4294966272  ;;  %v394_v0 = vmov 0.0|0.0   ;;  %vm395_vm0 = vmmov 0   ;;  %v396_v1 = vmov 0.0   ;;  %v58_v2 = vld [vmem:[#allocation5] sm:$0xff] }
  0x37   :  { %274 = vmatprep.subr.bf16.mxu0 %v394_v0  ;;  %260 = vmatprep.mubr.msk.f32.mxu0 %vm395_vm0, %v396_v1  ;;  %v59_v3 = vld [vmem:[#allocation5 + $0x8] sm:$0xff]  ;;  %v60_v4 = vld [vmem:[#allocation5 + $0x10] sm:$0xff]  ;;  %v61_v6 = vld [vmem:[#allocation5 + $0x18] sm:$0xff]  ;;  %vm69_vm1 = vcmask 261120   ;;  %s397_s26 = smov [#allocation8]  }
  0x38   :  { %280 = vmatprep.subr.bf16.mxu1 %v394_v0  ;;  %271 = vmatprep.mubr.msk.f32.mxu1 %vm395_vm0, %v396_v1  ;;  %v275_v5 = vpack.c.bf16 %v59_v3, %v58_v2  ;;  %v278_v7 = vpack.c.bf16 %v61_v6, %v60_v4  ;;  %v57_v8 = vld [vmem:[#allocation2] sm:$0xff]  ;;  %v145_v9 = vld [vmem:[#allocation7] sm:$0xff]  ;;  %v146_v10 = vld [vmem:[#allocation7 + $0x8] sm:$0xff]  ;;  %s229_s27 = sshll.u32 %s397_s26, 4  ;;  %s230_s27 = int_to_ptr.vmem [resolvable:$true] %s229_s27 }
  0x39   :  { %v281_v11 = vpack.c.bf16 %v146_v10, %v145_v9  ;;  %v147_v12 = vld [vmem:[#allocation7 + $0x10] sm:$0xff]  ;;  %v148_v13 = vld [vmem:[#allocation7 + $0x18] sm:$0xff]  ;;  %s361_s28 = scalar_lea.vmem %s230_s27, 128  ;;  %p366_p11 = scmp.lt.s32.totalorder %s230_s27, %s230_s27 }
  0x3a   :  { %276 = vmatpush3.bf16.msra.mxu0 %v275_v5  ;;  %v284_v14 = vpack.c.bf16 %v148_v13, %v147_v12  ;;  %v239_v15 = vld [vmem:[%s484_s2] ss:$0 sm:$0xff]  ;;  %p362_p10 = scmp.ne.s32.totalorder %s230_s27, %s361_s28  ;;  %p367_p12 = scmp.lt.s32.totalorder %s361_s28, %s361_s28 }
  0x3b   :  { %277 = vmatprep.subr.bf16.mxu0 %v394_v0  ;;  %282 = vmatpush3.bf16.msra.mxu1 %v281_v11 }
  0x3c   :  { %283 = vmatprep.subr.bf16.mxu1 %v394_v0  ;;  %p368_p13 = por %p367_p12, %p366_p11 }
  0x3e   :  { %279 = vmatpush3.bf16.msra.mxu0 %v278_v7  ;;  %p369_p0 = pnand %p368_p13, %p362_p10 }
  0x3f   :  { %285 = vmatpush3.bf16.msra.mxu1 %v284_v14 }
  0x41   :  { %261 = vmatmul.mubr.msk.f32.vlgmr.msra.gmra.mrb[0].mxu0 %vm69_vm1, %v57_v8 }
 0x114   :  { %v139_v16 = vpop.f32.mrb[0].mxu0 }
 0x115   :  { %v140_v17 = vadd.f32 %v239_v15, %v139_v16  ;;  %v262_v18 = vpop.f32.mrb[1].mxu0 }
 0x117   :  { %v143_v19 = vadd.f32 %v140_v17, %v57_v8 }
 0x119   :  { %v144_v20 = vmax.f32 %v143_v19, 0.0 }
 0x11b   :  { %272 = vmatmul.mubr.msk.f32.vlgmr.msra.gmra.mrb[0].mxu1 %vm69_vm1, %v144_v20 }
 0x1ee   :  { %v218_v21 = vpop.f32.mrb[0].mxu1 }
 0x1ef   :  { %222 = vst [vmem:[#allocation8] sm:$0xff] %v218_v21  ;;  %v273_v22 = vpop.f32.mrb[1].mxu1 }
 0x1f0   :  { %372 = shalt.err (!%p369_p0)
}
 0x1f1   :  { %s373_s30 = scalar_lea.hbm %s486_s4, 128 }
 0x1f2   :  { %p374_p1 = scmp.ne.s32.totalorder %s486_s4, %s373_s30  ;;  %p377_p2 = scmp.lt.u32.totalorder %s373_s30, %s486_s4 }
 0x1f4   :  { %p379_p3 = pnand %p377_p2, %p374_p1 }
 0x1f6   :  { %382 = shalt.err (!%p379_p3)
}
 0x1f7   :  { %232 = dma.vmem_to_hbm [thread:$0]  %s230_s27, 128, %s486_s4, [#allocation4]  }
 0x1f8   :  { %387 = dma.done.wait [#allocation4], 128  }
 0x1f9   :  { %388 = vsyncadd [#allocation4], 4294967168 }
 0x1fa   :  { %236 = vsyncpa [#allocation3], 1 }
 0x1fb   :  { %237 = vsyncpa [#allocation6], 1 }
 0x1fc   :  { %238 = vsyncpa [#allocation4], 1 }

</bundles_post_ra>
